<compile_context>
chip_gen: v7x
topology: tpu7x:2x2x1
jax: 0.10.0
libtpu: 0.0.40
codegen_flags: <defaults>
</compile_context>

<pallas_src>
import functools

import jax
import jax.numpy as jnp
from jax.experimental import pallas as pl
from jax.experimental.pallas import tpu as pltpu

LRELU_SLOPE = 0.1


def get_padding(kernel_size, dilation=1):
    return int((kernel_size * dilation - dilation) / 2)


def _round_up(v, m):
    return (v + m - 1) // m * m


def _leaky(v):
    return jnp.where(v > 0, v, LRELU_SLOPE * v)


@functools.lru_cache(maxsize=None)
def _roll_is_np_like():
    """Probe pltpu.roll's rotation direction once (guards API convention)."""
    def probe(x_ref, o_ref):
        o_ref[...] = pltpu.roll(x_ref[...], shift=1, axis=1)

    x = jnp.broadcast_to(jnp.arange(128, dtype=jnp.float32), (8, 128))
    y = pl.pallas_call(
        probe, out_shape=jax.ShapeDtypeStruct((8, 128), jnp.float32))(x)
    # np.roll semantics: element 0 moves to lane 1.
    return bool(y[0, 1] == 0.0)


def _make_kernel(*, K, d1, d2, p1, p2, TT, C_p, T_real, roll_np_like):
    """Build the kernel body with all static configuration baked in."""
    H = p1 + p2  # halo width (samples per side of the tile)

    def rotate(x, s):
        # result[:, j] = x[:, (j + s) % TT]   (XLU lane rotation)
        amt = (-s) % TT if roll_np_like else s % TT
        return pltpu.roll(x, shift=amt, axis=1)

    def shifted(center, left, right, s, lane):
        """tile[:, j] == value at global column g0 + j + s.

        center covers [g0, g0+TT); left covers [g0-Lw, g0);
        right covers [g0+TT, g0+TT+Rw).  Requires |s| <= Lw, Rw < TT.
        """
        if s == 0:
            return center
        rolled = rotate(center, s)
        dt = center.dtype
        if s > 0:
            if s == 1:
                return jnp.where(lane == TT - 1, right[:, :1], rolled)
            fill = jnp.concatenate(
                [jnp.zeros((C_p, TT - s), dt), right[:, :s]], axis=1)
            return jnp.where(lane >= TT - s, fill, rolled)
        m = -s
        lw = left.shape[1]
        if m == 1:
            return jnp.where(lane == 0, left[:, lw - 1:], rolled)
        fill = jnp.concatenate(
            [left[:, lw - m:], jnp.zeros((C_p, TT - m), dt)], axis=1)
        return jnp.where(lane < m, fill, rolled)

    def conv_center(act_c, act_l, act_r, resid_plus_bias, w_f, d, p, lane):
        # One fused MXU matmul over all K taps: (C, K*C) @ (K*C, TT).
        taps = [shifted(act_c, act_l, act_r, k * d - p, lane)
                for k in range(K)]
        xs = jnp.concatenate(taps, axis=0)                       # (K*C, TT)
        y = jnp.dot(w_f, xs, preferred_element_type=jnp.float32)
        return y + resid_plus_bias                               # f32

    def conv_strip(x_strip, w_f, b, d, p, n_out):
        # x_strip: (C, 2p + n_out) raw x over globally *contiguous* columns;
        # returns conv + bias + residual at strip columns [p, p + n_out).
        a = _leaky(x_strip)
        taps = [a[:, k * d:k * d + n_out] for k in range(K)]
        xs = jnp.concatenate(taps, axis=0)                       # (K*C, n_out)
        y = jnp.dot(w_f, xs, preferred_element_type=jnp.float32)
        return y + b + x_strip[:, p:p + n_out].astype(jnp.float32)

    def kernel(x_ref, xh_ref, w1_ref, b1_ref, w2_ref, b2_ref, o_ref):
        t = pl.program_id(1)
        g0 = t * TT                              # global start of this tile

        xc = x_ref[0]                            # (C_p, TT), input dtype
        halos = xh_ref[0, 0]                     # (C_p, 2H)
        xl = halos[:, :H]                        # global [g0-H, g0)
        xr = halos[:, H:]                        # global [g0+TT, g0+TT+H)
        cdt = xc.dtype

        w1 = w1_ref[...]                         # (C_p, K*C_p), compute dtype
        w2 = w2_ref[...]
        b1 = b1_ref[...].astype(jnp.float32)     # (C_p, 1)
        b2 = b2_ref[...].astype(jnp.float32)

        lane = jax.lax.broadcasted_iota(jnp.int32, (C_p, TT), 1)
        pos = g0 + lane                          # global time index per lane

        # ---- stage 1: x1 = conv_d1(lrelu(x)) + b1 + x  over the center tile
        a_c = _leaky(xc)
        a_l = _leaky(xl)
        a_r = _leaky(xr)
        x1_c = conv_center(a_c, a_l[:, H - p1:], a_r[:, :p1],
                           xc.astype(jnp.float32) + b1, w1, d1, p1, lane)
        # Zero positions beyond the true sequence length so stage 2 sees the
        # same zero padding as PyTorch's Conv1d.
        x1_c = jnp.where(pos < T_real, x1_c, 0.0)

        # ---- stage 1 on the two edge strips (gives stage 2 its p2-wide halo)
        left_strip = jnp.concatenate([xl, xc[:, :p1]], axis=1)
        x1_l = conv_strip(left_strip, w1, b1, d1, p1, p2)   # [g0-p2, g0)
        right_strip = jnp.concatenate([xc[:, TT - p1:], xr], axis=1)
        x1_r = conv_strip(right_strip, w1, b1, d1, p1, p2)  # [g0+TT, g0+TT+p2)
        # Validity masks (PyTorch zero-pads outside [0, T_real)).
        x1_l = jnp.where(t > 0, x1_l, 0.0)
        pos_r = pos[:, :p2] + TT
        x1_r = jnp.where(pos_r < T_real, x1_r, 0.0)

        # ---- stage 2: out = conv_d2(lrelu(x1)) + b2 + x1
        a1_c = _leaky(x1_c).astype(cdt)
        a1_l = _leaky(x1_l).astype(cdt)
        a1_r = _leaky(x1_r).astype(cdt)
        y2 = conv_center(a1_c, a1_l, a1_r, x1_c + b2, w2, d2, p2, lane)
        o_ref[0] = y2.astype(o_ref.dtype)

    return kernel


def resblock2(x, w1, b1, w2, b2, dilations=(1, 3), t_tile=None):
    """x: (B, C, T); w*: (C_out, C_in, K) torch Conv1d layout; b*: (C,)."""
    B, C, T = x.shape
    K = int(w1.shape[-1])
    d1, d2 = int(dilations[0]), int(dilations[1])
    p1, p2 = get_padding(K, d1), get_padding(K, d2)
    H = p1 + p2
    cdt = x.dtype
    assert K % 2 == 1, "ResBlock2 'same' padding assumes an odd kernel size"

    # ---- generation-aware tile / VMEM budget -------------------------------
    try:
        vmem_cap = int(pltpu.get_tpu_info().vmem_capacity_bytes)
    except Exception:
        vmem_cap = 64 * 1024 * 1024
    if t_tile is None:
        # 128 MiB parts (v5e/v6e) can run 2x larger time tiles than v7x (64 MiB).
        t_tile = 1024 if vmem_cap >= 100 * 1024 * 1024 else 512
    vmem_limit = min((vmem_cap * 3) // 4, 96 * 1024 * 1024)

    TT = _round_up(min(t_tile, _round_up(max(T, 1), 128)), 128)
    T_pad = _round_up(T, TT)
    NT = T_pad // TT
    C_p = _round_up(C, 8)
    assert max(p1, p2) < TT

    # ---- pad channels / time (zero padding == the conv's 'same' padding) ----
    x_p = jnp.pad(x, ((0, 0), (0, C_p - C), (0, T_pad - T)))

    # ---- tiny halo side-array: (B, NT, C_p, 2H); left H cols then right H ---
    xg = jnp.pad(x_p, ((0, 0), (0, 0), (H, H)))
    parts = []
    for t in range(NT):
        left = xg[:, :, t * TT:t * TT + H]                      # [g0-H, g0)
        right = xg[:, :, (t + 1) * TT + H:(t + 1) * TT + 2 * H]  # [g0+TT, ..+H)
        parts.append(jnp.concatenate([left, right], axis=-1))
    xh = jnp.stack(parts, axis=1)                               # (B, NT, C_p, 2H)

    # ---- fuse weights: (C_out, C_in, K) -> lane-dense (C_out, K*C_in) -------
    def fuse(w):
        wp = jnp.pad(w, ((0, C_p - C), (0, C_p - C), (0, 0)))
        return jnp.transpose(wp, (0, 2, 1)).reshape(C_p, K * C_p).astype(cdt)

    w1f, w2f = fuse(w1), fuse(w2)
    b1c = jnp.pad(b1, (0, C_p - C)).reshape(C_p, 1).astype(jnp.float32)
    b2c = jnp.pad(b2, (0, C_p - C)).reshape(C_p, 1).astype(jnp.float32)

    kernel = _make_kernel(K=K, d1=d1, d2=d2, p1=p1, p2=p2, TT=TT, C_p=C_p,
                          T_real=T, roll_np_like=_roll_is_np_like())

    # TODO(synk): weights/bias could be single-buffered (pl.Buffered(1)) to
    # reclaim a little VMEM on v7x; left at the default double-buffering.
    out = pl.pallas_call(
        kernel,
        out_shape=jax.ShapeDtypeStruct((B, C_p, T_pad), cdt),
        grid_spec=pltpu.PrefetchScalarGridSpec(
            num_scalar_prefetch=0,
            grid=(B, NT),
            in_specs=[
                pl.BlockSpec((1, C_p, TT), lambda b, t: (b, 0, t)),         # x
                pl.BlockSpec((1, 1, C_p, 2 * H), lambda b, t: (b, t, 0, 0)),  # halos
                pl.BlockSpec((C_p, K * C_p), lambda b, t: (0, 0)),          # w1
                pl.BlockSpec((C_p, 1), lambda b, t: (0, 0)),                # b1
                pl.BlockSpec((C_p, K * C_p), lambda b, t: (0, 0)),          # w2
                pl.BlockSpec((C_p, 1), lambda b, t: (0, 0)),                # b2
            ],
            out_specs=pl.BlockSpec((1, C_p, TT), lambda b, t: (b, 0, t)),
        ),
        compiler_params=pltpu.CompilerParams(
            dimension_semantics=("parallel", "parallel"),
            vmem_limit_bytes=vmem_limit),
    )(x_p, xh, w1f, b1c, w2f, b2c)

    return out[:, :C, :T]


def resblock2_ref(x, w1, b1, w2, b2, dilations=(1, 3)):
    """Pure-JAX reference using conv_general_dilated (for validation)."""
    def conv1d(x, w, b, d):
        pad = get_padding(w.shape[-1], d)
        y = jax.lax.conv_general_dilated(
            x, w, window_strides=(1,), padding=[(pad, pad)],
            rhs_dilation=(d,),
            dimension_numbers=("NCH", "OIH", "NCH"))
        return y + b[None, :, None]

    for w, b, d in ((w1, b1, dilations[0]), (w2, b2, dilations[1])):
        xt = jnp.where(x > 0, x, LRELU_SLOPE * x)
        xt = conv1d(xt, w, b, d)
        x = xt + x
    return x


def _make_params(key, C, K):
    k_w1, k_b1, k_w2, k_b2 = jax.random.split(key, 4)
    # init_weights: N(0, 0.01) conv weights; weight_norm is identity at init.
    w1 = 0.01 * jax.random.normal(k_w1, (C, C, K), dtype=jnp.float32)
    w2 = 0.01 * jax.random.normal(k_w2, (C, C, K), dtype=jnp.float32)
    bound = 1.0 / (C * K) ** 0.5  # PyTorch Conv1d default bias init range
    b1 = jax.random.uniform(k_b1, (C,), minval=-bound, maxval=bound,
                            dtype=jnp.float32)
    b2 = jax.random.uniform(k_b2, (C,), minval=-bound, maxval=bound,
                            dtype=jnp.float32)
    return w1, b1, w2, b2


if __name__ == "__main__":
    key = jax.random.PRNGKey(0)
    dilations = (1, 3)

    # --- test 1: the module's nominal small shape -------------------------
    B, C, T, K = 2, 4, 16, 3
    k_x, k_p, k_x2, k_p2 = jax.random.split(key, 4)
    x = jax.random.normal(k_x, (B, C, T), dtype=jnp.float32)
    w1, b1, w2, b2 = _make_params(k_p, C, K)

    out = jax.block_until_ready(resblock2(x, w1, b1, w2, b2, dilations))
    ref = resblock2_ref(x, w1, b1, w2, b2, dilations)
    assert out.shape == (B, C, T)
    assert jnp.allclose(out, ref, atol=1e-5, rtol=1e-5), "mismatch (test 1)"

    # --- test 2: multi-tile path (halos, masks, channel/time padding) ------
    B2, C2, T2 = 1, 6, 300
    x2 = jax.random.normal(k_x2, (B2, C2, T2), dtype=jnp.float32)
    w1b, b1b, w2b, b2b = _make_params(k_p2, C2, K)
    out2 = jax.block_until_ready(
        resblock2(x2, w1b, b1b, w2b, b2b, dilations, t_tile=128))
    ref2 = resblock2_ref(x2, w1b, b1b, w2b, b2b, dilations)
    assert out2.shape == (B2, C2, T2)
    assert jnp.allclose(out2, ref2, atol=1e-5, rtol=1e-5), "mismatch (test 2)"

    print("KERNEL_OK")
</pallas_src>

<mosaic_0001>
module attributes {stable_mosaic.version = 11 : i64} {
  func.func @probe(%arg0: memref<8x128xf32, #tpu.memory_space<vmem>>, %arg1: memref<8x128xf32, #tpu.memory_space<vmem>>) attributes {dimension_semantics = [], scalar_prefetch = 0 : i64, scratch_operands = 0 : i64, tpu.core_type = #tpu.core_type<tc>} {
    %c0 = arith.constant 0 : index
    %c0_0 = arith.constant 0 : index
    %0 = vector.load %arg0[%c0, %c0_0] : memref<8x128xf32, #tpu.memory_space<vmem>>, vector<8x128xf32>
    %c1_i32 = arith.constant 1 : i32
    %1 = tpu.dynamic_rotate %0 by %c1_i32 dim 1 : vector<8x128xf32>, i32 -> vector<8x128xf32>
    %c0_1 = arith.constant 0 : index
    %c0_2 = arith.constant 0 : index
    %2 = vector.load %arg1[%c0_1, %c0_2] : memref<8x128xf32, #tpu.memory_space<vmem>>, vector<8x128xf32>
    tpu.vector_store %arg1[%c0_1, %c0_2], %1 {strides = array<i32>} : memref<8x128xf32, #tpu.memory_space<vmem>>, vector<8x128xf32>,
    return
  }
}

</mosaic_0001>

<bundles_post_ra>
// kernel: tpu_custom_call.1
= control target key start
LH: loop header
LB: loop body
LE: loop exit
PB: predicated region body
PF: predicated region fallthrough
CT: control target
= control target key end

     0   :  { %6 = vsyncpa [#allocation3], 0  ;;  %s128_s0 = inlined_call_operand.hbm [shape: f32[8,128], index: 0, kind: input, shape index: {}]   ;;  %s129_s1 = inlined_call_operand.hbm [shape: f32[8,128], index: 1, kind: output, shape index: {}]  }
   0x1   :  { %7 = vsyncpa [#allocation4], 0  ;;  %s91_s6 = smov [#allocation2]   ;;  %s43_s10 = scalar_lea.hbm %s128_s0, 128 }
   0x2   :  { %s14_s7 = sshll.u32 %s91_s6, 4  ;;  %p44_p0 = scmp.ne.s32.totalorder %s128_s0, %s43_s10  ;;  %s15_s7 = int_to_ptr.vmem [resolvable:$true] %s14_s7 }
   0x3   :  { %p47_p1 = scmp.lt.u32.totalorder %s43_s10, %s128_s0 }
   0x5   :  { %p49_p2 = pnand %p47_p1, %p44_p0 }
   0x7   :  { %52 = shalt.err (!%p49_p2)
}
   0x8   :  { %s53_s15 = scalar_lea.vmem %s15_s7, 128  ;;  %p58_p4 = scmp.lt.s32.totalorder %s15_s7, %s15_s7 }
   0x9   :  { %p54_p3 = scmp.ne.s32.totalorder %s15_s7, %s53_s15  ;;  %p59_p5 = scmp.lt.s32.totalorder %s53_s15, %s53_s15 }
   0xb   :  { %p60_p6 = por %p59_p5, %p58_p4 }
   0xd   :  { %p61_p7 = pnand %p60_p6, %p54_p3 }
   0xf   :  { %64 = shalt.err (!%p61_p7)
}
  0x10   :  { %17 = dma.hbm_to_vmem [thread:$0]  %s128_s0, 128, %s15_s7, [#allocation3]  }
  0x11   :  { %87 = dma.done.wait [#allocation3], 128  }
  0x12   :  { %88 = vsyncadd [#allocation3], 4294967168  ;;  %v21_v0 = vld [vmem:[#allocation2] sm:$0xff]  ;;  %s92_s18 = smov 1   ;;  %s93_s19 = smov [#allocation5]  }
  0x13   :  { %22 = vrot.lane.b32.xlu0 %v21_v0, %s92_s18  ;;  %s31_s20 = sshll.u32 %s93_s19, 4  ;;  %s32_s20 = int_to_ptr.vmem [resolvable:$true] %s31_s20 }
  0x14   :  { %s65_s21 = scalar_lea.vmem %s32_s20, 128  ;;  %p70_p9 = scmp.lt.s32.totalorder %s32_s20, %s32_s20 }
  0x15   :  { %p66_p8 = scmp.ne.s32.totalorder %s32_s20, %s65_s21  ;;  %p71_p10 = scmp.lt.s32.totalorder %s65_s21, %s65_s21 }
  0x17   :  { %p72_p11 = por %p71_p10, %p70_p9 }
  0x19   :  { %p73_p12 = pnand %p72_p11, %p66_p8 }
  0x85   :  { %v23_v1 = vpop.permute.xlu0 %22 }
  0x86   :  { %24 = vst [vmem:[#allocation5] sm:$0xff] %v23_v1 }
  0x87   :  { %76 = shalt.err (!%p73_p12)
}
  0x88   :  { %s77_s0 = scalar_lea.hbm %s129_s1, 128 }
  0x89   :  { %p78_p13 = scmp.ne.s32.totalorder %s129_s1, %s77_s0  ;;  %p81_p0 = scmp.lt.u32.totalorder %s77_s0, %s129_s1 }
  0x8b   :  { %p83_p1 = pnand %p81_p0, %p78_p13 }
  0x8d   :  { %86 = shalt.err (!%p83_p1)
}
  0x8e   :  { %34 = dma.vmem_to_hbm [thread:$0]  %s32_s20, 128, %s129_s1, [#allocation4]  }
  0x8f   :  { %89 = dma.done.wait [#allocation4], 128  }
  0x90   :  { %90 = vsyncadd [#allocation4], 4294967168 }
  0x91   :  { %38 = vsyncpa [#allocation3], 1 }
  0x92   :  { %39 = vsyncpa [#allocation4], 1 }

</bundles_post_ra>
